<compile_context>
chip_gen: v6e
topology: v6e:2x2x1
jax: 0.10.0
libtpu: 0.0.40
codegen_flags: <defaults>
</compile_context>

<pallas_src>
import jax
import jax.numpy as jnp
from jax.experimental import pallas as pl
from jax.experimental.pallas import tpu as pltpu


def _cdiv(a, b):
    return -(-a // b)


def _vmem_capacity_bytes():
    try:
        info = pltpu.get_tpu_info()
        cap = int(getattr(info, "vmem_capacity_bytes", 0) or 0)
        if cap > 0:
            return cap
    except Exception:
        pass
    return 64 * 1024 * 1024  # conservative fallback: v7x per-TensorCore VMEM


def _plan_tiling(N, C, C4, HW, itemsize):
    """Pick (t_hw, n_hw, bn, vmem_limit_bytes) for the streaming grid."""
    cap = _vmem_capacity_bytes()
    # Explicit scoped-VMEM ceiling (defaults are only 16/32 MiB):
    # ~96 MiB on 128 MiB parts (v5e/v6e), ~48 MiB on v7x's 64 MiB/TC.
    vmem_limit = min((cap * 3) // 4, 100 * 1024 * 1024)
    budget = (vmem_limit * 4) // 5  # headroom for compiler scratch

    weights_bytes = 2 * (C4 * C + 2 * C4) * 4  # double-buffered resident weights (tiny)

    def per_lane_bytes(bn):
        stream = 4 * bn * C * itemsize          # (x + out) blocks, each double-buffered
        temps = (2 * C + 2 * C4 + 4) * 4        # f32 x-row, gated row, h, s/att temporaries
        return stream + temps

    # 1) lane (H*W) tile: biggest 128-multiple that fits; 512-2048 lanes already
    #    sits at the HBM roofline, so cap at 2048.
    lane_cap = max(1, (budget - weights_bytes) // per_lane_bytes(1))
    lane_cap = max(128, min(2048, (lane_cap // 128) * 128))
    t_hw = HW if HW <= lane_cap else lane_cap   # full extent OR 128-multiple: both legal
    n_hw = _cdiv(HW, t_hw)

    # 2) batch tile: fill each block to ~4 MiB so small feature maps do not pay
    #    the per-grid-step overhead, without blowing the VMEM budget.
    row_bytes = max(1, C * t_hw * itemsize)
    bn = max(1, min(N, (4 * 1024 * 1024) // row_bytes))
    while bn > 1 and weights_bytes + t_hw * per_lane_bytes(bn) > budget:
        bn = max(1, bn // 2)

    # 3) keep both v7x TensorCores busy: the parallel grid must hold >= 2 programs.
    if _cdiv(N, bn) * n_hw < 2:
        if N >= 2 and bn > 1:
            bn = _cdiv(N, 2)
        elif n_hw == 1 and HW > 128:
            t_hw = max(128, _cdiv(_cdiv(HW, 2), 128) * 128)
            n_hw = _cdiv(HW, t_hw)

    # 4) never let the limit fall below what the chosen blocks actually need
    #    (possible at the 128-lane floor with extremely large C).
    need = weights_bytes + t_hw * per_lane_bytes(bn) + (4 << 20)
    if need > vmem_limit:
        vmem_limit = min(need, max(cap - (2 << 20), vmem_limit))

    return t_hw, n_hw, bn, int(vmem_limit)


def _temporal_attention_kernel(x_ref, w1_ref, b1_ref, w2_ref, b2_ref, o_ref):
    """One (bn, C, T) channels-first block.

    x_ref : (bn, C, T)   input block, H*W on the lane axis
    w1_ref: (C4, C)      conv1 1x1 weight (PyTorch (out, in) layout, kxk squeezed)
    b1_ref: (C4, 1)      conv1 bias (broadcast over lanes)
    w2_ref: (C4, 1)      conv2 1x1 weight (single output channel)
    b2_ref: (1, 1)       conv2 bias, SMEM scalar
    o_ref : (bn, C, T)   output block
    """
    # Weights are block-resident; load/cast once per grid step (hoisted out of the loop).
    w1 = w1_ref[...].astype(jnp.float32)            # (C4, C)
    b1 = b1_ref[...].astype(jnp.float32)            # (C4, 1)
    w2 = w2_ref[...].astype(jnp.float32)            # (C4, 1)
    b2 = b2_ref[0, 0].astype(jnp.float32)           # scalar

    def one_batch(b):
        xf = x_ref[b].astype(jnp.float32)                               # (C, T) f32
        # conv1 (1x1) == channel matmul on the MXU, f32 accumulation.
        h = jnp.dot(w1, xf, preferred_element_type=jnp.float32)         # (C4, T)
        h = jnp.maximum(h + b1, 0.0)                                    # relu
        # conv2 has one output channel -> VPU multiply + sublane (XLU) reduction,
        # avoiding a degenerate N=1 MXU matmul / padded lane-1 result tile.
        s = jnp.sum(h * w2, axis=0, keepdims=True) + b2                 # (1, T)
        # Sigmoid: EUP exp + exact reciprocal (mem-bound kernel, precision is free).
        att = pl.reciprocal(1.0 + jnp.exp(-s), approx=False)            # (1, T) f32
        # Gate in f32 (matches fp32 PyTorch); single cast at the store.
        o_ref[b] = (xf * att).astype(o_ref.dtype)

    nb = x_ref.shape[0]
    if nb <= 4:
        # Short fixed trip-count: unroll for LLO scheduler visibility.
        for b in range(nb):
            one_batch(b)
    else:
        def body(b, carry):
            one_batch(b)
            return carry
        jax.lax.fori_loop(0, nb, body, 0)


def temporal_attention(x_nchw, w1, b1, w2, b2):
    """x_nchw: (N, C, H, W). w1: (C//4, C), b1: (C//4, 1), w2: (C//4, 1), b2: (1, 1)."""
    N, C, H, W = x_nchw.shape
    C4 = w1.shape[0]
    HW = H * W

    # Native channels-first layout; pure reshape => no extra HBM traffic.
    x = x_nchw.reshape(N, C, HW)

    t_hw, n_hw, bn, vmem_limit = _plan_tiling(N, C, C4, HW, x.dtype.itemsize)
    grid = (_cdiv(N, bn), n_hw)   # partial edge blocks handled by masked writes

    out = pl.pallas_call(
        _temporal_attention_kernel,
        out_shape=jax.ShapeDtypeStruct((N, C, HW), x.dtype),
        grid_spec=pltpu.PrefetchScalarGridSpec(
            num_scalar_prefetch=0,
            grid=grid,
            in_specs=[
                pl.BlockSpec((bn, C, t_hw), lambda n, j: (n, 0, j)),   # x block
                pl.BlockSpec((C4, C), lambda n, j: (0, 0)),            # conv1 weight
                pl.BlockSpec((C4, 1), lambda n, j: (0, 0)),            # conv1 bias
                pl.BlockSpec((C4, 1), lambda n, j: (0, 0)),            # conv2 weight
                pl.BlockSpec(memory_space=pltpu.MemorySpace.SMEM),     # conv2 bias scalar
            ],
            out_specs=pl.BlockSpec((bn, C, t_hw), lambda n, j: (n, 0, j)),
        ),
        compiler_params=pltpu.CompilerParams(
            # Disjoint output blocks on both axes -> shard across TensorCores.
            dimension_semantics=("parallel", "parallel"),
            vmem_limit_bytes=vmem_limit,
        ),
    )(x, w1, b1, w2, b2)

    return out.reshape(N, C, H, W)


def _reference(x_nchw, w1, b1, w2, b2):
    # Pure-JAX reference of the PyTorch forward (1x1 convs as channel contractions).
    N, C, H, W = x_nchw.shape
    x = x_nchw.reshape(N, C, H * W)
    h = jnp.maximum(jnp.einsum("dc,ncp->ndp", w1, x) + b1[None], 0.0)
    s = jnp.einsum("do,ndp->nop", w2, h) + b2[0, 0]
    att = 1.0 / (1.0 + jnp.exp(-s))                      # (N, 1, H*W)
    return (x * att).reshape(N, C, H, W)


if __name__ == "__main__":
    key = jax.random.PRNGKey(0)
    k_x, k_w1, k_b1, k_w2, k_b2 = jax.random.split(key, 5)

    N, C, H, W = 2, 4, 16, 16          # channels=4 -> hidden = channels // 4 = 1
    C4 = max(C // 4, 1)

    x = jax.random.normal(k_x, (N, C, H, W), dtype=jnp.float32)

    # 1x1 conv parameters in the native PyTorch (out_channels, in_channels) layout.
    w1 = 0.1 * jax.random.normal(k_w1, (C4, C), dtype=jnp.float32)
    b1 = 0.1 * jax.random.normal(k_b1, (C4, 1), dtype=jnp.float32)
    w2 = 0.1 * jax.random.normal(k_w2, (C4, 1), dtype=jnp.float32)
    b2 = 0.1 * jax.random.normal(k_b2, (1, 1), dtype=jnp.float32)

    out = jax.block_until_ready(temporal_attention(x, w1, b1, w2, b2))
    ref = _reference(x, w1, b1, w2, b2)

    assert out.shape == x.shape
    assert jnp.allclose(out, ref, atol=1e-5, rtol=1e-5), "mismatch vs reference"

    print("KERNEL_OK")
</pallas_src>

<mosaic_0001>
module attributes {stable_mosaic.version = 11 : i64} {
  func.func @_temporal_attention_kernel(%arg0: i32, %arg1: i32, %arg2: memref<1x4x256xf32, #tpu.memory_space<vmem>>, %arg3: memref<1x4xf32, #tpu.memory_space<vmem>>, %arg4: memref<1x1xf32, #tpu.memory_space<vmem>>, %arg5: memref<1x1xf32, #tpu.memory_space<vmem>>, %arg6: memref<1x1xf32, #tpu.memory_space<smem>>, %arg7: memref<1x4x256xf32, #tpu.memory_space<vmem>>) attributes {dimension_semantics = [#tpu.dimension_semantics<parallel>, #tpu.dimension_semantics<parallel>], iteration_bounds = array<i64: 2, 1>, scalar_prefetch = 0 : i64, scratch_operands = 0 : i64, tpu.core_type = #tpu.core_type<tc>, window_params = [{transform_indices = @transform_0, window_bounds = array<i64: 1, 4, 256>}, {pipeline_mode = #tpu.pipeline_mode<synchronous>, transform_indices = @transform_1, window_bounds = array<i64: 1, 4>}, {pipeline_mode = #tpu.pipeline_mode<synchronous>, transform_indices = @transform_2, window_bounds = array<i64: 1, 1>}, {pipeline_mode = #tpu.pipeline_mode<synchronous>, transform_indices = @transform_3, window_bounds = array<i64: 1, 1>}, {transform_indices = @transform_4, window_bounds = array<i64: 1, 1>}, {transform_indices = @transform_5, window_bounds = array<i64: 1, 4, 256>}]} {
    %c0 = arith.constant 0 : index
    %c0_0 = arith.constant 0 : index
    %0 = vector.load %arg3[%c0, %c0_0] : memref<1x4xf32, #tpu.memory_space<vmem>>, vector<1x4xf32>
    %c0_1 = arith.constant 0 : index
    %c0_2 = arith.constant 0 : index
    %1 = vector.load %arg4[%c0_1, %c0_2] : memref<1x1xf32, #tpu.memory_space<vmem>>, vector<1x1xf32>
    %c0_3 = arith.constant 0 : index
    %c0_4 = arith.constant 0 : index
    %2 = vector.load %arg5[%c0_3, %c0_4] : memref<1x1xf32, #tpu.memory_space<vmem>>, vector<1x1xf32>
    %c0_5 = arith.constant 0 : index
    %c0_6 = arith.constant 0 : index
    %3 = memref.load %arg6[%c0_5, %c0_6] : memref<1x1xf32, #tpu.memory_space<smem>>
    %c0_7 = arith.constant 0 : index
    %c0_8 = arith.constant 0 : index
    %c0_9 = arith.constant 0 : index
    %4 = vector.load %arg2[%c0_7, %c0_8, %c0_9] : memref<1x4x256xf32, #tpu.memory_space<vmem>>, vector<1x4x256xf32>
    %5 = vector.shape_cast %4 : vector<1x4x256xf32> to vector<4x256xf32>
    %cst = arith.constant dense<0.000000e+00> : vector<1x256xf32>
    %6 = tpu.matmul %0, %5, %cst {dimension_numbers = #tpu.dot_dimension_numbers<[1], [0], [0], [1], [0, 0, 1, 1], [], []>} : vector<1x4xf32>, vector<4x256xf32>, vector<1x256xf32> -> vector<1x256xf32>
    %7 = vector.broadcast %1 : vector<1x1xf32> to vector<1x256xf32>
    %8 = arith.addf %6, %7 : vector<1x256xf32>
    %cst_10 = arith.constant 0.000000e+00 : f32
    %9 = vector.broadcast %cst_10 : f32 to vector<1x256xf32>
    %10 = arith.maximumf %8, %9 : vector<1x256xf32>
    %11 = vector.broadcast %2 : vector<1x1xf32> to vector<1x256xf32>
    %12 = arith.mulf %10, %11 : vector<1x256xf32>
    %cst_11 = arith.constant dense<0.000000e+00> : vector<256xf32>
    %13 = vector.multi_reduction <add>, %12, %cst_11 [0] : vector<1x256xf32> to vector<256xf32>
    %14 = vector.shape_cast %13 : vector<256xf32> to vector<1x256xf32>
    %15 = vector.broadcast %3 : f32 to vector<1x256xf32>
    %16 = arith.addf %14, %15 : vector<1x256xf32>
    %cst_12 = arith.constant 0.000000e+00 : f32
    %17 = vector.broadcast %cst_12 : f32 to vector<1x256xf32>
    %18 = arith.subf %17, %16 : vector<1x256xf32>
    %19 = math.exp %18 : vector<1x256xf32>
    %cst_13 = arith.constant 1.000000e+00 : f32
    %20 = vector.broadcast %cst_13 : f32 to vector<1x256xf32>
    %21 = arith.addf %20, %19 : vector<1x256xf32>
    %22 = tpu.reciprocal %21 : vector<1x256xf32> -> vector<1x256xf32>
    %23 = vector.broadcast %22 : vector<1x256xf32> to vector<4x256xf32>
    %24 = arith.mulf %5, %23 : vector<4x256xf32>
    %c0_14 = arith.constant 0 : index
    %c0_15 = arith.constant 0 : index
    %c0_16 = arith.constant 0 : index
    %25 = vector.load %arg7[%c0_14, %c0_15, %c0_16] : memref<1x4x256xf32, #tpu.memory_space<vmem>>, vector<1x4x256xf32>
    %26 = vector.shape_cast %25 : vector<1x4x256xf32> to vector<4x256xf32>
    %27 = vector.shape_cast %24 : vector<4x256xf32> to vector<1x4x256xf32>
    tpu.vector_store %arg7[%c0_14, %c0_15, %c0_16], %27 {strides = array<i32>} : memref<1x4x256xf32, #tpu.memory_space<vmem>>, vector<1x4x256xf32>,
    return
  }
  func.func @transform_0(%arg0: i32, %arg1: i32) -> (i32, i32, i32) {
    %c0_i32 = arith.constant 0 : i32
    %c0_i32_0 = arith.constant 0 : i32
    return %arg0, %c0_i32, %arg1 : i32, i32, i32
  }
  func.func @transform_1(%arg0: i32, %arg1: i32) -> (i32, i32) {
    %c0_i32 = arith.constant 0 : i32
    %c0_i32_0 = arith.constant 0 : i32
    %c0_i32_1 = arith.constant 0 : i32
    return %c0_i32, %c0_i32_0 : i32, i32
  }
  func.func @transform_2(%arg0: i32, %arg1: i32) -> (i32, i32) {
    %c0_i32 = arith.constant 0 : i32
    %c0_i32_0 = arith.constant 0 : i32
    %c0_i32_1 = arith.constant 0 : i32
    return %c0_i32, %c0_i32_0 : i32, i32
  }
  func.func @transform_3(%arg0: i32, %arg1: i32) -> (i32, i32) {
    %c0_i32 = arith.constant 0 : i32
    %c0_i32_0 = arith.constant 0 : i32
    %c0_i32_1 = arith.constant 0 : i32
    return %c0_i32, %c0_i32_0 : i32, i32
  }
  func.func @transform_4(%arg0: i32, %arg1: i32) -> (i32, i32) {
    %c0_i32 = arith.constant 0 : i32
    %c0_i32_0 = arith.constant 0 : i32
    %c0_i32_1 = arith.constant 0 : i32
    return %c0_i32, %c0_i32_0 : i32, i32
  }
  func.func @transform_5(%arg0: i32, %arg1: i32) -> (i32, i32, i32) {
    %c0_i32 = arith.constant 0 : i32
    %c0_i32_0 = arith.constant 0 : i32
    return %arg0, %c0_i32, %arg1 : i32, i32, i32
  }
}

</mosaic_0001>

<bundles_post_ra>
// kernel: tpu_custom_call.1
= control target key start
LH: loop header
LB: loop body
LE: loop exit
PB: predicated region body
PF: predicated region fallthrough
CT: control target
= control target key end

     0   :  { %s893_s0 = inlined_call_operand.hbm [shape: f32[2,4,256], index: 0, kind: input, shape index: {}]   ;;  %s894_s1 = inlined_call_operand.vmem [shape: f32[1,4], index: 1, kind: input, shape index: {}]   ;;  %s895_s2 = inlined_call_operand.<no memory space> [shape: f32[1,1], index: 2, kind: input, shape index: {}]   ;;  %s896_s4 = inlined_call_operand.<no memory space> [shape: f32[1,1], index: 4, kind: input, shape index: {}]   ;;  %s897_s5 = inlined_call_operand.hbm [shape: f32[2,4,256], index: 5, kind: output, shape index: {}]   ;;  %s898_s3 = inlined_call_operand.<no memory space> [shape: f32[1,1], index: 3, kind: input, shape index: {}]  }
   0x1   :  { %v10_v0 = vstv %s895_s2  ;;  %v12_v1 = vstv %s898_s3  ;;  %14 = sst [smem:[#allocation4]] %s896_s4 }
   0x2   :  { %11 = vst [vmem:[#allocation2] sm:$0x1] %v10_v0  ;;  %13 = vst [vmem:[#allocation3] sm:$0x1] %v12_v1 }
   0x3   :  { %15 = vsyncpa [#allocation6], 0 }
   0x4   :  { %17 = vsyncpa [#allocation6 + $0x1], 0 }
   0x5   :  { %18 = vsyncpa [#allocation7], 0 }
   0x6   :  { %20 = vsyncpa [#allocation7 + $0x1], 0  ;;  %s752_s24 = smov 0   ;;  %s754_s25 = smov 0  }
   0x7   :  { %s756_s26 = smov 0   ;;  %s758_s2 = smov 0  }
   0x8   :  { %s760_s27 = smov 0   ;;  %s762_s3 = smov 0  }
   0x9 LB: > { %s505_s4 = sadd.s32 4294967295, %s707_s3   ;;  %s506_s28 = sadd.s32 4294967294, %s707_s3   ;;  %s707_s3 = sphi %s762_s3, %s26_s3   ;;  %s703_s27 = sphi %s760_s27, %s910_s27   ;;  %s699_s2 = sphi %s758_s2, %s909_s2   ;;  %s695_s26 = sphi %s756_s26, %s908_s26   ;;  %s691_s25 = sphi %s754_s25, %s907_s25   ;;  %s687_s24 = sphi %s752_s24, %s906_s24  }
   0xa   : > { %s38_s29 = sadd.s32 1, %s703_s27  ;;  %s47_s30 = sadd.s32 1, %s695_s26 }
   0xb   : > { %p40_p0 = scmp.ge.s32.totalorder %s38_s29, 2  ;;  %p54_p1 = scmp.ne.s32.totalorder %s695_s26, %s691_s25 }
   0xc   : > { %p55_p2 = scmp.eq.s32.totalorder %s707_s3, 0  ;;  %p60_p3 = scmp.ne.s32.totalorder %s691_s25, %s687_s24 }
   0xd   : > { %s912_s29 = smov (%p40_p0, %s38_s29), 0  ;;  %p61_p5 = scmp.eq.s32.totalorder %s505_s4, 0 }
   0xe   : > { %p793_p4 = por %p55_p2, %p54_p1  ;;  %s42_s7 = ssub.s32 %s703_s27, %s912_s29 }
   0xf   : > { %p170_p6 = scmp.eq.s32.totalorder %s505_s4, 1  ;;  %p45_p7 = scmp.eq.s32.totalorder %s42_s7, 0 }
  0x10   : > { %p799_p8 = por %p61_p5, %p60_p3  ;;  %p176_p10 = scmp.eq.s32.totalorder %s506_s28, 1 }
  0x11   : > { %p803_p9 = por %p170_p6, %p54_p1  ;;  %p537_p13 = scmp.lt.s32.totalorder %s707_s3, 2 }
  0x12   : > { %s808_s10 = scalar_select %p45_p7, %s695_s26, %s47_s30  }
  0x13   : > { %p810_p11 = por %p176_p10, %p60_p3  ;;  %s208_s12 = sand.u32 1, %s695_s26  }
  0x14   : > { %s509_s13 = sshll.u32 %s208_s12, 3  ;;  %s523_s14 = sshll.u32 %s703_s27, 7 }
  0x15   : > { %s902_s11 = scalar_select %p810_p11, 1, 0 }
  0x16   : > { %s220_s17 = scalar_lea.hbm %s893_s0, %s523_s14  ;;  %s212_s18 = scalar_lea.vmem [#allocation5], %s509_s13 }
  0x17   : > { %s222_s19 = sshll.u32 %s212_s18, 4  ;;  %p823_p0 = pnand %p537_p13, %p793_p4  ;;  %s223_s19 = int_to_ptr.vmem [resolvable:$true] %s222_s19 }
  0x18   : > { %p512_p1 = scmp.ge.s32.totalorder %s707_s3, 1  ;;  %p227_p2 = scmp.lt.s32.totalorder %s707_s3, 3 }
  0x19   : > { %s209_s21 = scalar_lea.sflag [#allocation6], %s208_s12  ;;  %p601_p3 = pneg %p823_p0 }
  0x1a   : > { %s612_s22 = scalar_lea.vmem %s223_s19, 128  ;;  %s709_s23 = smov [#allocation5]  }
  0x1b   : > { %p613_p5 = scmp.ne.s32.totalorder %s223_s19, %s612_s22  ;;  %s617_s4 = sshll.u32 %s709_s23, 4  ;;  %s618_s4 = int_to_ptr.vmem [resolvable:$false] %s617_s4 }
  0x1c   : > { %s619_s28 = scalar_lea.vmem %s618_s4, 256  ;;  %p620_p10 = scmp.lt.s32.totalorder %s223_s19, %s618_s4 }
  0x1d   : > { %p615_p6 = pnand %p613_p5, %p601_p3  ;;  %p621_p12 = scmp.lt.s32.totalorder %s619_s28, %s612_s22 }
  0x1f   : > { %p616_p7 = pneg %p615_p6  ;;  %p622_p4 = por %p621_p12, %p620_p10 }
  0x21   : > { %p623_p13 = pnand %p622_p4, %p616_p7 }
  0x23   : > { %626 = shalt.err (!%p623_p13)
}
  0x24   : > { %532 = dma.hbm_to_vmem [thread:$0]  (!%p823_p0), %s220_s17, 128, %s223_s19, %s209_s21  }
  0x25   : > { %p228_p11 = pnand %p512_p1, %p227_p2 }
  0x26   : > { %s838_s30 = sand.u32 (!%p228_p11), 1, %s691_s25  }
  0x27   : > { %231 = sbr.rel (%p228_p11) target bundleno = 306 (0x132), region = 40  ;;  %s513_s6 = sshll.u32 (!%p228_p11), %s838_s30, 3 }
  0x28   : > { %s234_s7 = scalar_lea.sflag (!%p228_p11), [#allocation6], %s838_s30  ;;  %s237_s12 = scalar_lea.vmem (!%p228_p11), [#allocation5], %s513_s6 }
  0x2c   : > { %678 = dma.done.wait (%p799_p8), %s234_s7, 128  }
  0x2d   : > { %680 = vsyncadd (%p799_p8), %s234_s7, 4294967168  ;;  %v710_v2 = vmov 0.0   ;;  %v711_v3 = vmov 0   ;;  %v270_v4 = vld [vmem:[%s237_s12] sm:$0xff]  ;;  %vm286_vm0 = vcmask 1043456   ;;  %vm282_vm1 = vcmask 31744  }
  0x2e   : > { %355 = vmatprep.mubr.f32.mxu0 %v710_v2  ;;  %589 = vset.pattern.permute.xlu0 %v711_v3  ;;  %v267_v5 = vld [vmem:[#allocation2] sm:$0x1]  ;;  %v281_v6 = vcombine.high %v270_v4, %v270_v4  ;;  %v268_v8 = vld [vmem:[#allocation3] sm:$0x1]  ;;  %v276_v9 = vlaneseq  ;;  %s269_s8 = sld [smem:[#allocation4]]  ;;  %s524_s15 = sshll.u32 %s699_s2, 7 }
  0x2f   : > { %273 = vperm.xlu0 %589, %v267_v5   ;;  %v266_v7 = vld [vmem:[%s894_s1] sm:$0x1]  ;;  %s263_s16 = scalar_lea.vmem [#allocation8], %s513_s6  ;;  %s419_s20 = scalar_lea.hbm %s897_s5, %s524_s15 }
  0x30   : > { %515 = vmatprep.subr.msk.mxu0 %vm286_vm0, %v281_v6  ;;  %v277_v10 = vshrl.u32 %v276_v9, 7  ;;  %s421_s17 = sshll.u32 %s263_s16, 4  ;;  %s405_s21 = scalar_lea.sflag [#allocation7], %s838_s30  ;;  %s422_s17 = int_to_ptr.vmem [resolvable:$true] %s421_s17 }
  0x31   : > { %516 = vmatpush1.msk.msra.mxu0 %vm286_vm0, %v270_v4  ;;  %s627_s22 = scalar_lea.vmem %s422_s17, 128  ;;  %s712_s23 = smov [#allocation8]  }
  0x32   : > { %517 = vmatmul.mubr.msk.f32.vlgmr.msra.gmra.mxu0 %vm282_vm1, %v266_v7  ;;  %v278_v11 = vsub.s32 0, %v277_v10  ;;  %p628_p8 = scmp.ne.s32.totalorder %s422_s17, %s627_s22  ;;  %s631_s4 = sshll.u32 %s712_s23, 4  ;;  %s632_s4 = int_to_ptr.vmem [resolvable:$false] %s631_s4 }
  0x33   : > { %366 = vperm.xlu0 %589, %v268_v8   ;;  %s633_s2 = scalar_lea.vmem %s632_s4, 256  ;;  %p634_p0 = scmp.lt.s32.totalorder %s422_s17, %s632_s4 }
  0x34   : > { %v377_v21 = vstv %s269_s8  ;;  %p629_p11 = pnand %p628_p8, %p803_p9  ;;  %p635_p1 = scmp.lt.s32.totalorder %s633_s2, %s627_s22 }
  0x36   : > { %p630_p12 = pneg %p629_p11  ;;  %p636_p2 = por %p635_p1, %p634_p0 }
  0x38   : > { %p637_p3 = pnand %p636_p2, %p630_p12 }
  0xaa   : > { %v274_v12 = vpop.permute.xlu0 %273 }
  0xab   : > { %v279_v13 = vrot.slane %v274_v12, %v278_v11 }
  0xae   : > { %v367_v14 = vpop.permute.xlu0 %366 }
  0xaf   : > { %v372_v18 = vrot.slane %v367_v14, %v278_v11 }
  0xf2   : > { %v357_v15 = vpop.f32.mrf.mxu0 }
  0xf3   : > { %v358_v16 = vadd.f32 %v357_v15, %v279_v13 }
  0xf4   : > { %v359_v17 = vpop.f32.mrf.mxu0 }
  0xf5   : > { %v362_v19 = vmax.f32 %v358_v16, 0.0  ;;  %v360_v20 = vadd.f32 %v359_v17, %v279_v13 }
  0xf7   : > { %v373_v22 = vmul.f32 %v372_v18, %v362_v19  ;;  %v363_v23 = vmax.f32 %v360_v20, 0.0 }
  0xf9   : > { %v378_v24 = vadd.f32 %v377_v21, %v373_v22  ;;  %v374_v25 = vmul.f32 %v372_v18, %v363_v23 }
  0xfb   : > { %v380_v26 = vsub.f32 0.0, %v378_v24  ;;  %v379_v27 = vadd.f32 %v377_v21, %v374_v25 }
  0xfd   : > { %v382_v28 = vmul.f32 1.442695, %v380_v26  ;;  %v381_v29 = vsub.f32 0.0, %v379_v27 }
  0xff   : > { %591 = vpow2.f32 %v382_v28  ;;  %v384_v30 = vmul.f32 1.442695, %v381_v29 }
 0x101   : > { %593 = vpow2.f32 %v384_v30 }
 0x10c   : > { %v592_v31 = vpop.eup %591 }
 0x10d   : > { %v386_v32 = vadd.f32 1.0, %v592_v31 }
 0x10e   : > { %v594_v33 = vpop.eup %593 }
 0x10f   : > { %595 = vrcp.f32 %v386_v32  ;;  %v387_v34 = vadd.f32 1.0, %v594_v33 }
 0x111   : > { %597 = vrcp.f32 %v387_v34 }
 0x11c   : > { %v596_v35 = vpop.eup %595 }
 0x11d   : > { %v393_v37 = vrot.slane %v596_v35, %v278_v11 }
 0x11e   : > { %v598_v36 = vpop.eup %597 }
 0x11f   : > { %v397_v38 = vrot.slane %v598_v36, %v278_v11 }
 0x121   : > { %v400_v39 = vcombine.low %v393_v37, %v397_v38 }
 0x123   : > { %v402_v40 = vmul.f32 %v400_v39, %v270_v4 }
 0x125   : > { %403 = vst [vmem:[%s263_s16] sm:$0xff] %v402_v40 }
 0x126   : > { %640 = shalt.err (!%p637_p3)
}
 0x127   : > { %s641_s28 = scalar_lea.hbm %s419_s20, 128  ;;  %s645_s7 = scalar_lea.hbm %s897_s5, 256 }
 0x128   : > { %p642_p5 = scmp.ne.s32.totalorder %s419_s20, %s641_s28  ;;  %p646_p10 = scmp.lt.s32.totalorder %s419_s20, %s897_s5 }
 0x129   : > { %p647_p4 = scmp.lt.s32.totalorder %s645_s7, %s641_s28 }
 0x12a   : > { %p643_p6 = pnand %p642_p5, %p803_p9 }
 0x12b   : > { %p648_p13 = por %p647_p4, %p646_p10 }
 0x12c   : > { %p644_p7 = pneg %p643_p6 }
 0x12e   : > { %p649_p8 = pnand %p648_p13, %p644_p7 }
 0x130   : > { %652 = shalt.err (!%p649_p8)
}
 0x131   : > { %527 = dma.vmem_to_hbm [thread:$0]  (%p803_p9), %s422_s17, 128, %s419_s20, %s405_s21  }
 0x132 PF: > { %s433_s14 = sand.u32 1, %s687_s24   ;;  %p904_p11 = scmp.ne.s32.totalorder %s902_s11, 0 }
 0x133   : > { %p905_p12 = scmp.ge.s32.totalorder %s707_s3, 2  ;;  %s434_s8 = scalar_lea.sflag [#allocation7], %s433_s14 }
 0x135   : > { %p534_p0 = pnand %p905_p12, %p904_p11 }
 0x137   : > { %p535_p1 = pneg %p534_p0 }
 0x139   : > { %682 = dma.done.wait (%p535_p1), %s434_s8, 128  }
 0x13a   : > { %684 = vsyncadd (%p535_p1), %s434_s8, 4294967168  ;;  %s26_s3 = sadd.s32 1, %s707_s3   ;;  %s906_s24 = smov %s691_s25 }
 0x13b   : > { %p23_p2 = scmp.ge.s32.totalorder %s26_s3, 4   ;;  %s907_s25 = smov %s695_s26 }
 0x13c   : > { %s908_s26 = smov %s808_s10  ;;  %s909_s2 = smov %s703_s27 }
 0x13d   : > { %s910_s27 = smov %s912_s29  ;;  %25 = sbr.rel (!%p23_p2) target bundleno = 9 (0x9), region = 85 }
 0x142   :  { %439 = vsyncpa [#allocation6], 1 }
 0x143   :  { %441 = vsyncpa [#allocation6 + $0x1], 1 }
 0x144   :  { %442 = vsyncpa [#allocation7], 1 }
 0x145   :  { %444 = vsyncpa [#allocation7 + $0x1], 1 }

</bundles_post_ra>
